<compile_context>
chip_gen: v5e
topology: v5e:2x2
jax: 0.10.0
libtpu: 0.0.40
codegen_flags: <defaults>
</compile_context>

<pallas_src>
import functools
import math

import numpy as np
import jax
import jax.numpy as jnp
from jax.experimental import pallas as pl
from jax.experimental.pallas import tpu as pltpu

# Older JAX releases expose the same dataclass under TPUCompilerParams.
_CompilerParams = getattr(pltpu, "CompilerParams", None) or getattr(pltpu, "TPUCompilerParams")


# ---------------------------------------------------------------------------
# Kernels
# ---------------------------------------------------------------------------
def propagate_hidden_kernel(ids_ref, cnt_ref, a_ref, xw_ref, b_ref, w2_ref, o_ref, acc_ref):
    """Accumulate A_tile @ XW1 over the (block-sparse) K axis; at the last K step
    apply bias + ReLU and the fused layer-2 transform: o = relu(acc + b1) @ W2."""
    i = pl.program_id(0)
    k = pl.program_id(1)

    @pl.when(k == 0)
    def _():
        acc_ref[...] = jnp.zeros_like(acc_ref)

    @pl.when(k < cnt_ref[i])          # skip padded / all-zero K blocks
    def _():
        acc_ref[...] += jnp.dot(a_ref[...], xw_ref[...],
                                preferred_element_type=jnp.float32)

    @pl.when(k == pl.num_programs(1) - 1)
    def _():
        h = jnp.maximum(acc_ref[...] + b_ref[...], 0.0)
        o_ref[...] = jnp.dot(h.astype(jnp.bfloat16), w2_ref[...],
                             preferred_element_type=jnp.float32).astype(o_ref.dtype)


def propagate_logits_kernel(ids_ref, cnt_ref, a_ref, hw_ref, b_ref, o_ref, acc_ref, *,
                            num_classes):
    """Accumulate A_tile @ HW2 over the K axis; at the last K step add bias and take a
    lane-masked log_softmax over the first `num_classes` columns."""
    i = pl.program_id(0)
    k = pl.program_id(1)

    @pl.when(k == 0)
    def _():
        acc_ref[...] = jnp.zeros_like(acc_ref)

    @pl.when(k < cnt_ref[i])
    def _():
        acc_ref[...] += jnp.dot(a_ref[...], hw_ref[...],
                                preferred_element_type=jnp.float32)

    @pl.when(k == pl.num_programs(1) - 1)
    def _():
        z = acc_ref[...] + b_ref[...]
        col = jax.lax.broadcasted_iota(jnp.int32, z.shape, 1)
        z = jnp.where(col < num_classes, z, jnp.float32(-1e30))   # mask padded class lanes
        m = jnp.max(z, axis=1, keepdims=True)
        zs = z - m
        lse = jnp.log(jnp.sum(jnp.exp(zs), axis=1, keepdims=True))
        o_ref[...] = zs - lse


# ---------------------------------------------------------------------------
# Wrapper
# ---------------------------------------------------------------------------
def _round_up(x, m):
    return (x + m - 1) // m * m


def _vmem_cap_bytes():
    """Generation-specific VMEM cap: v5e/v6e have 128 MiB physical VMEM, v7x only 64 MiB."""
    try:
        kind = jax.devices()[0].device_kind.lower()
    except Exception:
        kind = ""
    if "v5" in kind or "v6" in kind:
        return 100 << 20
    return 48 << 20   # v7x (and unknown generations): leave headroom below 64 MiB


def gcn_forward(a_hat, x, w1, b1, w2, b2, *, tn=512, tk=512):
    """Full GCN forward. a_hat: [N,N], x: [N,Fin], w1:[Fin,H], b1:[1,H], w2:[H,C], b2:[1,C]."""
    n, _ = x.shape
    hid = w1.shape[1]
    c = w2.shape[1]

    h_pad = _round_up(hid, 128)
    c_pad = _round_up(c, 128)

    # Row (tn) and contraction (tk) tiles: multiples of 128, clamped to the graph size.
    n_min = _round_up(n, 128)
    tn = max(128, _round_up(min(tn, n_min), 128))
    tk = max(128, _round_up(min(tk, n_min), 128))
    n_pad = _round_up(n, math.lcm(tn, tk))
    num_row_tiles = n_pad // tn
    num_k_blocks = n_pad // tk

    def pad2(m, r, cdim):
        return jnp.pad(m, ((0, r - m.shape[0]), (0, cdim - m.shape[1])))

    # --- layer-1 feature transform: single tiny matmul, plain XLA (no pallas_call) ----
    xw1 = x.astype(jnp.float32) @ w1.astype(jnp.float32)               # [N, H] f32
    xw1_p = pad2(xw1, n_pad, h_pad).astype(jnp.bfloat16)

    a_f32 = pad2(a_hat.astype(jnp.float32), n_pad, n_pad)
    a_p = a_f32.astype(jnp.bfloat16)        # bf16 stream halves the dominant HBM traffic
    w2_p = pad2(w2.astype(jnp.float32), h_pad, c_pad).astype(jnp.bfloat16)
    b1_p = pad2(b1.astype(jnp.float32), 1, h_pad)
    b2_p = pad2(b2.astype(jnp.float32), 1, c_pad)

    # --- block-sparsity structure of A_hat (host side, scalar-prefetched to SMEM) -----
    a_np = np.asarray(a_f32)
    blocks_nz = (a_np.reshape(num_row_tiles, tn, num_k_blocks, tk) != 0.0).any(axis=(1, 3))
    counts = blocks_nz.sum(axis=1).astype(np.int32)
    max_blocks = int(max(1, counts.max()))
    ids = np.zeros((num_row_tiles, max_blocks), np.int32)
    for r in range(num_row_tiles):
        nz = np.nonzero(blocks_nz[r])[0]
        if nz.size:
            ids[r, : nz.size] = nz
            ids[r, nz.size:] = nz[-1]       # repeat last block -> pipeline skips the refetch
    blk_ids = jnp.asarray(ids.reshape(-1))  # flattened 1-D (avoids 2-D SMEM padding blowup)
    blk_cnt = jnp.asarray(counts)

    # --- VMEM budget (counts the double buffering of every BlockSpec operand) ---------
    vmem_bytes = (
        2 * tn * tk * 2                           # A tile, double buffered (bf16)
        + 2 * tk * max(h_pad, c_pad) * 2          # XW1 / HW2 K block, double buffered (bf16)
        + 2 * h_pad * c_pad * 2                   # W2 (double buffered even though invariant)
        + 2 * (h_pad + c_pad) * 4                 # biases (f32)
        + 2 * tn * c_pad * 4                      # output tile, double buffered (f32 worst case)
        + tn * max(h_pad, c_pad) * 4              # f32 accumulator scratch
        + (8 << 20)                               # compiler-internal headroom
    )
    vmem_bytes = int(min(max(vmem_bytes, 16 << 20), _vmem_cap_bytes()))

    cparams = _CompilerParams(
        # row tiles are independent -> megacore on v7x; K axis carries the accumulator
        dimension_semantics=("parallel", "arbitrary"),
        vmem_limit_bytes=vmem_bytes,
    )

    # index_maps receive the scalar-prefetch refs as trailing positional args
    def a_map(i, k, ids_ref, cnt_ref):
        return (i, ids_ref[i * max_blocks + k])

    def feat_map(i, k, ids_ref, cnt_ref):
        return (ids_ref[i * max_blocks + k], 0)

    def const_map(i, k, ids_ref, cnt_ref):
        return (0, 0)

    def row_map(i, k, ids_ref, cnt_ref):
        return (i, 0)

    grid = (num_row_tiles, max_blocks)

    # --- call 1: HW2 = relu(A @ XW1 + b1) @ W2 ----------------------------------------
    hw2 = pl.pallas_call(
        propagate_hidden_kernel,
        grid_spec=pltpu.PrefetchScalarGridSpec(
            num_scalar_prefetch=2,
            grid=grid,
            in_specs=[
                pl.BlockSpec((tn, tk), a_map),
                pl.BlockSpec((tk, h_pad), feat_map),
                pl.BlockSpec((1, h_pad), const_map),
                pl.BlockSpec((h_pad, c_pad), const_map),
            ],
            out_specs=pl.BlockSpec((tn, c_pad), row_map),
            scratch_shapes=[pltpu.VMEM((tn, h_pad), jnp.float32)],
        ),
        out_shape=jax.ShapeDtypeStruct((n_pad, c_pad), jnp.bfloat16),
        compiler_params=cparams,
    )(blk_ids, blk_cnt, a_p, xw1_p, b1_p, w2_p)

    # --- call 2: out = log_softmax(A @ HW2 + b2) --------------------------------------
    logp = pl.pallas_call(
        functools.partial(propagate_logits_kernel, num_classes=c),
        grid_spec=pltpu.PrefetchScalarGridSpec(
            num_scalar_prefetch=2,
            grid=grid,
            in_specs=[
                pl.BlockSpec((tn, tk), a_map),
                pl.BlockSpec((tk, c_pad), feat_map),
                pl.BlockSpec((1, c_pad), const_map),
            ],
            out_specs=pl.BlockSpec((tn, c_pad), row_map),
            scratch_shapes=[pltpu.VMEM((tn, c_pad), jnp.float32)],
        ),
        out_shape=jax.ShapeDtypeStruct((n_pad, c_pad), jnp.float32),
        compiler_params=cparams,
    )(blk_ids, blk_cnt, a_p, hw2, b2_p)

    return logp[:n, :c]


# ---------------------------------------------------------------------------
# Graph / parameter construction (JAX glue, outside the kernels)
# ---------------------------------------------------------------------------
def build_normalized_adjacency(edge_index, num_nodes):
    """Dense A_hat = D^-1/2 (A + I) D^-1/2 (PyG GCNConv defaults: symmetric norm,
    add_remaining_self_loops, unit edge weight; duplicate edges coalesced)."""
    src = edge_index[0]
    dst = edge_index[1]
    a = jnp.zeros((num_nodes, num_nodes), jnp.float32)
    a = a.at[dst, src].set(1.0)                                  # message flows src -> dst
    a = jnp.maximum(a, jnp.eye(num_nodes, dtype=jnp.float32))    # self loops (no double count)
    deg = jnp.sum(a, axis=1)
    d_inv_sqrt = jnp.where(deg > 0, 1.0 / jnp.sqrt(deg), 0.0)
    return a * d_inv_sqrt[:, None] * d_inv_sqrt[None, :]


def glorot(key, shape):
    fan_in, fan_out = shape
    limit = np.sqrt(6.0 / (fan_in + fan_out))
    return jax.random.uniform(key, shape, jnp.float32, -limit, limit)


def reference_forward(a_hat, x, w1, b1, w2, b2):
    h = a_hat @ (x @ w1) + b1
    h = jnp.maximum(h, 0.0)
    z = a_hat @ (h @ w2) + b2
    return jax.nn.log_softmax(z, axis=1)


if __name__ == "__main__":
    # ---- small deterministic problem (15 feature columns as in the spec) ----
    N = 200          # number of nodes
    INPUT_DIM = 15   # node feature dim
    HIDDEN_DIM = 32
    OUTPUT_DIM = 4   # number of classes

    key = jax.random.PRNGKey(0)
    k_feat, k_w1, k_w2 = jax.random.split(key, 3)

    # node features + column-wise standardization (guard constant columns)
    x_raw = jax.random.normal(k_feat, (N, INPUT_DIM), jnp.float32) * 3.0 + 1.0
    std = x_raw.std(axis=0)
    x = (x_raw - x_raw.mean(axis=0)) / jnp.where(std > 0, std, 1.0)

    # deterministic symmetric edge set: ring graph with both directions
    rows = jnp.concatenate([jnp.arange(N), (jnp.arange(N) + 1) % N])
    cols = jnp.concatenate([(jnp.arange(N) + 1) % N, jnp.arange(N)])
    edge_index = jnp.stack([rows, cols]).astype(jnp.int32)   # [2, 2N]

    a_hat = build_normalized_adjacency(edge_index, N)

    # GCNConv parameters: glorot weights, zero biases (deterministic)
    w1 = glorot(k_w1, (INPUT_DIM, HIDDEN_DIM))
    b1 = jnp.zeros((1, HIDDEN_DIM), jnp.float32)
    w2 = glorot(k_w2, (HIDDEN_DIM, OUTPUT_DIM))
    b2 = jnp.zeros((1, OUTPUT_DIM), jnp.float32)

    # tn=tk=128 -> 2 row tiles x up to 2 nonzero K blocks (exercises the K-tiled,
    # block-sparse accumulation path); defaults are tn=tk=512 for large graphs.
    out = gcn_forward(a_hat, x, w1, b1, w2, b2, tn=128, tk=128)
    out = jax.block_until_ready(out)

    ref = reference_forward(a_hat, x, w1, b1, w2, b2)
    assert out.shape == (N, OUTPUT_DIM)
    err = float(np.max(np.abs(np.asarray(out) - np.asarray(ref))))
    # bf16 inputs / f32 accumulation: bf16-level tolerance vs the f32 reference
    assert np.allclose(np.asarray(out), np.asarray(ref), rtol=5e-2, atol=5e-2), err

    print("KERNEL_OK")
</pallas_src>

<mosaic_0001>
module attributes {stable_mosaic.version = 11 : i64} {
  func.func @propagate_hidden_kernel(%arg0: i32, %arg1: i32, %arg2: memref<4xi32, #tpu.memory_space<smem>>, %arg3: memref<2xi32, #tpu.memory_space<smem>>, %arg4: memref<128x128xbf16, #tpu.memory_space<vmem>>, %arg5: memref<128x128xbf16, #tpu.memory_space<vmem>>, %arg6: memref<1x128xf32, #tpu.memory_space<vmem>>, %arg7: memref<128x128xbf16, #tpu.memory_space<vmem>>, %arg8: memref<128x128xbf16, #tpu.memory_space<vmem>>, %arg9: memref<128x128xf32, #tpu.memory_space<vmem>>) attributes {dimension_semantics = [#tpu.dimension_semantics<parallel>, #tpu.dimension_semantics<arbitrary>], iteration_bounds = array<i64: 2, 2>, scalar_prefetch = 2 : i64, scratch_operands = 1 : i64, tpu.core_type = #tpu.core_type<tc>, window_params = [{transform_indices = @transform_0, window_bounds = array<i64: 128, 128>}, {transform_indices = @transform_1, window_bounds = array<i64: 128, 128>}, {pipeline_mode = #tpu.pipeline_mode<synchronous>, transform_indices = @transform_2, window_bounds = array<i64: 1, 128>}, {pipeline_mode = #tpu.pipeline_mode<synchronous>, transform_indices = @transform_3, window_bounds = array<i64: 128, 128>}, {transform_indices = @transform_4, window_bounds = array<i64: 128, 128>}]} {
    %c0_i32 = arith.constant 0 : i32
    %0 = arith.cmpi eq, %arg1, %c0_i32 : i32
    %1 = arith.extui %0 : i1 to i32
    %c0_i32_0 = arith.constant 0 : i32
    %2 = arith.cmpi ne, %1, %c0_i32_0 : i32
    scf.if %2 {
      %cst = arith.constant 0.000000e+00 : f32
      %11 = vector.broadcast %cst : f32 to vector<128x128xf32>
      %c0 = arith.constant 0 : index
      %c0_3 = arith.constant 0 : index
      %12 = vector.load %arg9[%c0, %c0_3] : memref<128x128xf32, #tpu.memory_space<vmem>>, vector<128x128xf32>
      tpu.vector_store %arg9[%c0, %c0_3], %11 {strides = array<i32>} : memref<128x128xf32, #tpu.memory_space<vmem>>, vector<128x128xf32>,
    } else {
    }
    %3 = arith.index_cast %arg0 : i32 to index
    %4 = memref.load %arg3[%3] : memref<2xi32, #tpu.memory_space<smem>>
    %5 = arith.cmpi slt, %arg1, %4 : i32
    %6 = arith.extui %5 : i1 to i32
    %c0_i32_1 = arith.constant 0 : i32
    %7 = arith.cmpi ne, %6, %c0_i32_1 : i32
    scf.if %7 {
      %c0 = arith.constant 0 : index
      %c0_3 = arith.constant 0 : index
      %11 = vector.load %arg9[%c0, %c0_3] : memref<128x128xf32, #tpu.memory_space<vmem>>, vector<128x128xf32>
      %c0_4 = arith.constant 0 : index
      %c0_5 = arith.constant 0 : index
      %12 = vector.load %arg4[%c0_4, %c0_5] : memref<128x128xbf16, #tpu.memory_space<vmem>>, vector<128x128xbf16>
      %c0_6 = arith.constant 0 : index
      %c0_7 = arith.constant 0 : index
      %13 = vector.load %arg5[%c0_6, %c0_7] : memref<128x128xbf16, #tpu.memory_space<vmem>>, vector<128x128xbf16>
      %cst = arith.constant dense<0.000000e+00> : vector<128x128xf32>
      %14 = tpu.matmul %12, %13, %cst {dimension_numbers = #tpu.dot_dimension_numbers<[1], [0], [0], [1], [0, 0, 1, 1], [], []>} : vector<128x128xbf16>, vector<128x128xbf16>, vector<128x128xf32> -> vector<128x128xf32>
      %15 = arith.addf %11, %14 : vector<128x128xf32>
      %c0_8 = arith.constant 0 : index
      %c0_9 = arith.constant 0 : index
      %16 = vector.load %arg9[%c0_8, %c0_9] : memref<128x128xf32, #tpu.memory_space<vmem>>, vector<128x128xf32>
      tpu.vector_store %arg9[%c0_8, %c0_9], %15 {strides = array<i32>} : memref<128x128xf32, #tpu.memory_space<vmem>>, vector<128x128xf32>,
    } else {
    }
    %c1_i32 = arith.constant 1 : i32
    %8 = arith.cmpi eq, %arg1, %c1_i32 : i32
    %9 = arith.extui %8 : i1 to i32
    %c0_i32_2 = arith.constant 0 : i32
    %10 = arith.cmpi ne, %9, %c0_i32_2 : i32
    scf.if %10 {
      %c0 = arith.constant 0 : index
      %c0_3 = arith.constant 0 : index
      %11 = vector.load %arg9[%c0, %c0_3] : memref<128x128xf32, #tpu.memory_space<vmem>>, vector<128x128xf32>
      %c0_4 = arith.constant 0 : index
      %c0_5 = arith.constant 0 : index
      %12 = vector.load %arg6[%c0_4, %c0_5] : memref<1x128xf32, #tpu.memory_space<vmem>>, vector<1x128xf32>
      %13 = vector.broadcast %12 : vector<1x128xf32> to vector<128x128xf32>
      %14 = arith.addf %11, %13 : vector<128x128xf32>
      %cst = arith.constant 0.000000e+00 : f32
      %15 = vector.broadcast %cst : f32 to vector<128x128xf32>
      %16 = arith.maximumf %14, %15 : vector<128x128xf32>
      %17 = arith.truncf %16 : vector<128x128xf32> to vector<128x128xbf16>
      %c0_6 = arith.constant 0 : index
      %c0_7 = arith.constant 0 : index
      %18 = vector.load %arg7[%c0_6, %c0_7] : memref<128x128xbf16, #tpu.memory_space<vmem>>, vector<128x128xbf16>
      %cst_8 = arith.constant dense<0.000000e+00> : vector<128x128xf32>
      %19 = tpu.matmul %17, %18, %cst_8 {dimension_numbers = #tpu.dot_dimension_numbers<[1], [0], [0], [1], [0, 0, 1, 1], [], []>} : vector<128x128xbf16>, vector<128x128xbf16>, vector<128x128xf32> -> vector<128x128xf32>
      %20 = arith.truncf %19 : vector<128x128xf32> to vector<128x128xbf16>
      %c0_9 = arith.constant 0 : index
      %c0_10 = arith.constant 0 : index
      %21 = vector.load %arg8[%c0_9, %c0_10] : memref<128x128xbf16, #tpu.memory_space<vmem>>, vector<128x128xbf16>
      tpu.vector_store %arg8[%c0_9, %c0_10], %20 {strides = array<i32>} : memref<128x128xbf16, #tpu.memory_space<vmem>>, vector<128x128xbf16>,
    } else {
    }
    return
  }
  func.func @transform_0(%arg0: i32, %arg1: i32, %arg2: memref<4xi32, #tpu.memory_space<smem>>, %arg3: memref<2xi32, #tpu.memory_space<smem>>) -> (i32, i32) {
    %c2_i32 = arith.constant 2 : i32
    %0 = arith.muli %arg0, %c2_i32 : i32
    %1 = arith.addi %0, %arg1 : i32
    %2 = arith.index_cast %1 : i32 to index
    %3 = memref.load %arg2[%2] : memref<4xi32, #tpu.memory_space<smem>>
    %c0_i32 = arith.constant 0 : i32
    return %arg0, %3 : i32, i32
  }
  func.func @transform_1(%arg0: i32, %arg1: i32, %arg2: memref<4xi32, #tpu.memory_space<smem>>, %arg3: memref<2xi32, #tpu.memory_space<smem>>) -> (i32, i32) {
    %c2_i32 = arith.constant 2 : i32
    %0 = arith.muli %arg0, %c2_i32 : i32
    %1 = arith.addi %0, %arg1 : i32
    %2 = arith.index_cast %1 : i32 to index
    %3 = memref.load %arg2[%2] : memref<4xi32, #tpu.memory_space<smem>>
    %c0_i32 = arith.constant 0 : i32
    %c0_i32_0 = arith.constant 0 : i32
    return %3, %c0_i32 : i32, i32
  }
  func.func @transform_2(%arg0: i32, %arg1: i32, %arg2: memref<4xi32, #tpu.memory_space<smem>>, %arg3: memref<2xi32, #tpu.memory_space<smem>>) -> (i32, i32) {
    %c0_i32 = arith.constant 0 : i32
    %c0_i32_0 = arith.constant 0 : i32
    %c0_i32_1 = arith.constant 0 : i32
    return %c0_i32, %c0_i32_0 : i32, i32
  }
  func.func @transform_3(%arg0: i32, %arg1: i32, %arg2: memref<4xi32, #tpu.memory_space<smem>>, %arg3: memref<2xi32, #tpu.memory_space<smem>>) -> (i32, i32) {
    %c0_i32 = arith.constant 0 : i32
    %c0_i32_0 = arith.constant 0 : i32
    %c0_i32_1 = arith.constant 0 : i32
    return %c0_i32, %c0_i32_0 : i32, i32
  }
  func.func @transform_4(%arg0: i32, %arg1: i32, %arg2: memref<4xi32, #tpu.memory_space<smem>>, %arg3: memref<2xi32, #tpu.memory_space<smem>>) -> (i32, i32) {
    %c0_i32 = arith.constant 0 : i32
    %c0_i32_0 = arith.constant 0 : i32
    return %arg0, %c0_i32 : i32, i32
  }
}

</mosaic_0001>

<bundles_post_ra>
// kernel: tpu_custom_call.1
= control target key start
LH: loop header
LB: loop body
LE: loop exit
PB: predicated region body
PF: predicated region fallthrough
CT: control target
= control target key end

     0   :  { %s1607_s27 = smov [#allocation4]   ;;  %s1608_s28 = smov [#allocation5]   ;;  %s2048_s0 = inlined_call_operand.hbm [shape: s32[4], index: 0, kind: input, shape index: {}]   ;;  %s2049_s2 = inlined_call_operand.hbm [shape: bf16[256,256], index: 2, kind: input, shape index: {}]   ;;  %s2050_s3 = inlined_call_operand.hbm [shape: bf16[256,128], index: 3, kind: input, shape index: {}]   ;;  %s2051_s4 = inlined_call_operand.vmem [shape: f32[1,128], index: 4, kind: input, shape index: {}]   ;;  %s2052_s5 = inlined_call_operand.hbm [shape: bf16[128,128], index: 5, kind: input, shape index: {}]   ;;  %s2053_s6 = inlined_call_operand.hbm [shape: bf16[256,128], index: 6, kind: output, shape index: {}]   ;;  %s2054_s1 = inlined_call_operand.hbm [shape: s32[2], index: 1, kind: input, shape index: {}]  }
   0x1   :  { %2076 = sst [smem:[#allocation35_spill]] %s2051_s4  ;;  %s12_s23 = sshll.u32 %s2048_s0, 4  ;;  %s13_s23 = int_to_ptr.hbm [resolvable:$true] %s12_s23 }
   0x2   :  { %2077 = sst [smem:[#allocation36_spill]] %s2052_s5  ;;  %s17_s26 = sshll.u32 %s2054_s1, 4  ;;  %s18_s26 = int_to_ptr.hbm [resolvable:$true] %s17_s26 }
   0x3   :  { %2078 = sst [smem:[#allocation37_spill]] %s2053_s6 }
   0x4   :  { %15 = dma.hbm_to_smem %s13_s23, 16, %s1607_s27, [#allocation3] }
   0x5   :  { %20 = dma.hbm_to_smem %s18_s26, 16, %s1608_s28, [#allocation3] }
   0x6   :  { %1533 = dma.done.wait [#allocation3], 32 }
   0x7   :  { %1534 = vsyncadd [#allocation3], 4294967264 }
   0x8   :  { %23 = sfence }
   0x9   :  { %24 = vsyncpa [#allocation7], 0 }
   0xa   :  { %26 = vsyncpa [#allocation7 + $0x1], 0 }
   0xb   :  { %27 = vsyncpa [#allocation10], 0 }
   0xc   :  { %29 = vsyncpa [#allocation10 + $0x1], 0 }
   0xd   :  { %30 = vsyncpa [#allocation8], 0 }
   0xe   :  { %32 = vsyncpa [#allocation8 + $0x1], 0  ;;  %s1657_s0 = smov 0   ;;  %s1659_s29 = smov 0  }
   0xf   :  { %s1661_s1 = smov 0   ;;  %s1663_s30 = smov 0  }
  0x10   :  { %s1665_s7 = smov 0   ;;  %s1667_s8 = smov 0  }
  0x11   :  { %s1669_s9 = smov 0   ;;  %s1671_s10 = smov 0  }
  0x12   :  { %s1673_s11 = smov 0   ;;  %s1675_s12 = smov 0  }
  0x13   :  { %s1677_s13 = smov 0   ;;  %s1679_s14 = smov 0  }
  0x14   :  { %s1681_s15 = smov 0   ;;  %s1683_s16 = smov 0  }
  0x15 LB: > { %2079 = sst [smem:[#allocation22_spill]] %s1553_s0  ;;  %s1724_s17 = sadd.s32 4294967295, %s1605_s16   ;;  %s1605_s16 = sphi %s1683_s16, %s38_s16   ;;  %s1601_s15 = sphi %s1681_s15, %s2142_s15   ;;  %s1597_s14 = sphi %s1679_s14, %s2141_s14   ;;  %s1593_s13 = sphi %s1677_s13, %s2140_s13   ;;  %s1589_s12 = sphi %s1675_s12, %s2131_s12   ;;  %s1585_s11 = sphi %s1673_s11, %s2139_s11   ;;  %s1581_s10 = sphi %s1671_s10, %s2138_s10   ;;  %s1577_s9 = sphi %s1669_s9, %s2137_s9   ;;  %s1573_s8 = sphi %s1667_s8, %s2136_s8   ;;  %s1569_s7 = sphi %s1665_s7, %s2135_s7   ;;  %s1565_s30 = sphi %s1663_s30, %s2134_s30   ;;  %s1561_s1 = sphi %s1661_s1, %s2129_s1   ;;  %s1557_s29 = sphi %s1659_s29, %s2128_s29   ;;  %s1553_s0 = sphi %s1657_s0, %s2127_s0  }
  0x16   : > { %2080 = sst [smem:[#allocation23_spill]] %s1557_s29  ;;  %p78_p0 = scmp.ne.s32.totalorder %s1581_s10, %s1577_s9 }
  0x17   : > { %2081 = sst [smem:[#allocation24_spill]] %s1561_s1  ;;  %p2073_p1 = scmp.eq.s32.totalorder %s1724_s17, 0 }
  0x18   : > { %2082 = sst [smem:[#allocation25_spill]] %s1589_s12  ;;  %s928_s18 = sadd.s32 4294967294, %s1605_s16  }
  0x19   : > { %2083 = sst [smem:[#allocation26_spill]] %s1593_s13  ;;  %p110_p2 = scmp.ne.s32.totalorder %s1569_s7, %s1565_s30 }
  0x1a   : > { %2084 = sst [smem:[#allocation27_spill]] %s1597_s14  ;;  %p1732_p3 = por %p2073_p1, %p78_p0 }
  0x1b   : > { %p175_p4 = scmp.ne.s32.totalorder %s1561_s1, %s1557_s29  ;;  %p1740_p5 = por %p110_p2, %p2073_p1 }
  0x1c   : > { %p176_p6 = scmp.eq.s32.totalorder %s1724_s17, 3  ;;  %p181_p7 = scmp.ne.s32.totalorder %s1557_s29, %s1553_s0 }
  0x1d   : > { %s2086_s20 = scalar_select %p1740_p5, 1, 0 }
  0x1e   : > { %p182_p8 = scmp.eq.s32.totalorder %s928_s18, 3  ;;  %p1747_p9 = por %p176_p6, %p175_p4 }
  0x1f   : > { %2087 = sst [smem:[#allocation28_spill]] %s2086_s20  ;;  %p933_p10 = scmp.ge.s32.totalorder %s1605_s16, 1 }
  0x20   : > { %s2088_s21 = scalar_select %p1747_p9, 1, 0 }
  0x21   : > { %p1752_p11 = por %p182_p8, %p181_p7  ;;  %p189_p12 = scmp.lt.s32.totalorder %s1605_s16, 5 }
  0x22   : > { %2089 = sst [smem:[#allocation29_spill]] %s2088_s21  ;;  %s1609_s27 = smov [#allocation11]  }
  0x23   : > { %s2090_s22 = scalar_select %p1752_p11, 1, 0 }
  0x24   : > { %s2092_s5 = sld [smem:[#allocation36_spill]]  ;;  %p1760_p13 = pnand %p933_p10, %p189_p12 }
  0x25   : > { %2091 = sst [smem:[#allocation30_spill]] %s2090_s22  ;;  %s205_s28 = sshll.u32 %s1609_s27, 4  ;;  %s206_s28 = int_to_ptr.vmem [resolvable:$true] %s205_s28 }
  0x26   : > { %p1190_p0 = pneg %p1760_p13  ;;  %s2055_s30 = smov 64  }
  0x27   : > { %s2057_s9 = smov 4   ;;  %s47_s18 = sadd.s32 1, %s1597_s14 }
  0x28   : > { %p1191_p2 = pnand %p1190_p0, %p2073_p1  ;;  %p48_p4 = scmp.ge.s32.totalorder %s47_s18, 2 }
  0x29   : > { %s50_s23 = sadd.s32 1, %s1601_s15  ;;  %s929_s24 = sshll.u32 %s1601_s15, 1 }
  0x2a   : > { %s203_s25 = sshll.u32 %s2092_s5, 4  ;;  %s2144_s18 = smov (%p48_p4, %s47_s18), 0  ;;  %s204_s25 = int_to_ptr.hbm [resolvable:$true] %s203_s25 }
  0x2b   : > { %1193 = dma.hbm_to_vmem [thread:$0]  (!%p1191_p2), %s204_s25, 1024, %s206_s28, [#allocation10], %s2055_s30, %s2055_s30, %s2057_s9  }
  0x2c   : > { %2094 = sst [smem:[#allocation31_spill]] %s2144_s18  ;;  %s2146_s23 = smov (!%p48_p4, %s50_s23), %s1601_s15 }
  0x2d   : > { %p72_p6 = scmp.ne.s32.totalorder %s1585_s11, %s1581_s10  ;;  %s165_s27 = sadd.s32 1, %s1561_s1 }
  0x2e   : > { %p52_p7 = scmp.ge.s32.totalorder %s2146_s23, 2  ;;  %s1781_s5 = sadd.s32 %s1597_s14, %s929_s24 }
  0x2f   : > { %p73_p8 = scmp.eq.s32.totalorder %s1605_s16, 0  ;;  %s56_s25 = sld [smem:[#allocation4 + %s1781_s5]] }
  0x30   : > { %s2148_s23 = smov (%p52_p7, %s2146_s23), 0  ;;  %s2066_s22 = sand.u32 1, %s1585_s11  }
  0x31   : > { %2095 = sst [smem:[#allocation32_spill]] %s2148_s23  ;;  %p1789_p10 = por %p73_p8, %p72_p6 }
  0x32   : > { %s930_s24 = sshll.u32 %s2148_s23, 1  ;;  %s60_s30 = ssub.s32 %s1601_s15, %s2148_s23 }
  0x33   : > { %s58_s9 = sadd.s32 %s930_s24, %s2144_s18  ;;  %p163_p12 = scmp.eq.s32.totalorder %s60_s30, 0 }
  0x34   : > { %s59_s14 = sld [smem:[#allocation4 + %s58_s9]]  ;;  %p2074_p0 = scmp.lt.s32.totalorder %s1605_s16, 4 }
  0x35   : > { %s1799_s0 = scalar_select %p163_p12, %s1561_s1, %s165_s27  }
  0x36   : > { %s936_s6 = sshll.u32 %s2066_s22, 6  ;;  %s65_s24 = sadd.s32 1, %s1585_s11 }
  0x37   : > { %2097 = sst [smem:[#allocation33_spill]] %s1799_s0  ;;  %p1814_p4 = pnand %p2074_p0, %p1789_p10 }
  0x38   : > { %s1178_s21 = scalar_select %p1789_p10, [#allocation4], [#allocation13] }
  0x39   : > { %s1179_s4 = scalar_select %p1789_p10, %s1781_s5, 0 }
  0x3a   : > { %s61_s13 = ssub.s32 %s56_s25, %s59_s14  ;;  %s2150_s21 = smov (!%p2074_p0, %s1178_s21), [#allocation15] }
  0x3b   : > { %s62_s23 = sor.u32 %s61_s13, %s60_s30  ;;  %s2152_s4 = smov (!%p2074_p0, %s1179_s4), 0 }
  0x3c   : > { %p63_p2 = scmp.eq.s32.totalorder %s62_s23, 0  ;;  %s90_s18 = sld [smem:[#allocation4 + %s1781_s5]] }
  0x3d   : > { %s226_s14 = sld [smem:[%s2150_s21 + %s2152_s4]]  ;;  %s223_s25 = scalar_lea.vmem [#allocation6], %s936_s6 }
  0x3e   : > { %s1821_s22 = scalar_select %p63_p2, %s1585_s11, %s65_s24  }
  0x3f   : > { %s1826_s0 = sshll.u32 %s223_s25, 4  ;;  %s93_s13 = sld [smem:[#allocation4 + %s58_s9]]  ;;  %s237_s0 = int_to_ptr.vmem [resolvable:$true] %s1826_s0 }
  0x40   : > { %2099 = sst [smem:[#allocation34_spill]] %s1821_s22  ;;  %s1054_s30 = sshll.u32 %s1601_s15, 5 }
  0x41   : > { %s97_s23 = sadd.s32 1, %s1573_s8  ;;  %p104_p6 = scmp.ne.s32.totalorder %s1573_s8, %s1569_s7 }
  0x42   : > { %s248_s1 = sand.u32 1, %s1573_s8   ;;  %p1393_p2 = pneg %p1814_p4 }
  0x43   : > { %s231_s28 = sadd.s32 %s1054_s30, %s226_s14  ;;  %p1843_p10 = por %p104_p6, %p73_p8 }
  0x44   : > { %s940_s24 = sshll.u32 %s231_s28, 2  ;;  %s941_s9 = sshll.u32 %s248_s1, 6 }
  0x45   : > { %s94_s22 = ssub.s32 %s90_s18, %s93_s13  ;;  %s233_s20 = scalar_lea.hbm %s2049_s2, %s940_s24 }
  0x46   : > { %p1837_p7 = scmp.eq.s32.totalorder %s94_s22, 0  ;;  %s234_s6 = sshll.u32 %s233_s20, 4  ;;  %s235_s6 = int_to_ptr.hbm [resolvable:$true] %s234_s6 }
  0x47   : > { %s2102_s14 = sand.u32 1, %s1585_s11   ;;  %s1389_s30 = sshra.s32 %s235_s6, 4  ;;  %s1390_s30 = int_to_ptr.hbm [resolvable:$true] %s1389_s30 }
  0x48   : > { %s220_s25 = scalar_lea.sflag [#allocation7], %s2102_s14  ;;  %s1391_s18 = scalar_lea.hbm %s1390_s30, 64 }
  0x49   : > { %p1392_p12 = scmp.ne.s32.totalorder %s1390_s30, %s1391_s18  ;;  %s1396_s20 = scalar_lea.hbm %s2049_s2, 256 }
  0x4a   : > { %p1397_p8 = scmp.lt.s32.totalorder %s1390_s30, %s2049_s2  ;;  %p1398_p6 = scmp.lt.s32.totalorder %s1396_s20, %s1391_s18 }
  0x4b   : > { %p1394_p1 = pnand %p1393_p2, %p1392_p12 }
  0x4c   : > { %p1399_p11 = por %p1398_p6, %p1397_p8 }
  0x4d   : > { %p1395_p0 = pneg %p1394_p1 }
  0x4f   : > { %p1400_p9 = pnand %p1399_p11, %p1395_p0 }
  0x51   : > { %1403 = shalt.err (!%p1400_p9)
}
  0x52   : > { %s1612_s1 = smov 128   ;;  %s2103_s28 = smov 4  }
  0x53   : > { %s2104_s24 = smov 64   ;;  %s2154_s5 = smov (!%p1843_p10, %s1781_s5), 0 }
  0x54   : > { %1199 = dma.hbm_to_vmem [thread:$0]  (!%p1814_p4), %s235_s6, 1024, %s237_s0, %s220_s25, %s1612_s1, %s2104_s24, %s2103_s28  }
  0x55   : > { %s1868_s14 = scalar_select %p1837_p7, %s1573_s8, %s97_s23  }
  0x56   : > { %s1181_s27 = scalar_select %p1843_p10, [#allocation4], [#allocation14] }
  0x57   : > { %p2105_p1 = scmp.lt.s32.totalorder %s1605_s16, 4  ;;  %s246_s6 = sand.u32 1, %s1605_s16  }
  0x58   : > { %s250_s4 = scalar_lea.vmem [#allocation9], %s941_s9  ;;  %s247_s22 = scalar_lea.sflag [#allocation10], %s246_s6 }
  0x59   : > { %s2156_s27 = smov (!%p2105_p1, %s1181_s27), [#allocation16]  ;;  %p2106_p9 = pmov %p2105_p1 }
  0x5a   : > { %p2107_p11 = pmov %p2105_p1  ;;  %s261_s23 = sshll.u32 %s250_s4, 4  ;;  %s262_s23 = int_to_ptr.vmem [resolvable:$true] %s261_s23 }
  0x5b   : > { %s2158_s5 = smov (!%p2106_p9, %s2154_s5), 0  ;;  %s1426_s1 = scalar_lea.hbm %s2050_s3, 128 }
  0x5c   : > { %p1883_p0 = pnand %p2107_p11, %p1843_p10  ;;  %s253_s0 = sld [smem:[%s2156_s27 + %s2158_s5]] }
  0x5e   : > { %p1423_p7 = pneg %p1883_p0 }
  0x62   : > { %s1055_s25 = sshll.u32 %s253_s0, 6 }
  0x63   : > { %s258_s12 = scalar_lea.hbm %s2050_s3, %s1055_s25 }
  0x64   : > { %s259_s20 = sshll.u32 %s258_s12, 4  ;;  %s260_s20 = int_to_ptr.hbm [resolvable:$true] %s259_s20 }
  0x65   : > { %s1419_s21 = sshra.s32 %s260_s20, 4  ;;  %s1420_s21 = int_to_ptr.hbm [resolvable:$true] %s1419_s21 }
  0x66   : > { %s1421_s13 = scalar_lea.hbm %s1420_s21, 64  ;;  %p1427_p2 = scmp.lt.s32.totalorder %s1420_s21, %s2050_s3 }
  0x67   : > { %p1422_p4 = scmp.ne.s32.totalorder %s1420_s21, %s1421_s13  ;;  %p1428_p8 = scmp.lt.s32.totalorder %s1426_s1, %s1421_s13 }
  0x69   : > { %p1424_p10 = pnand %p1423_p7, %p1422_p4  ;;  %p1429_p6 = por %p1428_p8, %p1427_p2 }
  0x6b   : > { %p1425_p12 = pneg %p1424_p10 }
  0x6d   : > { %p1430_p1 = pnand %p1429_p6, %p1425_p12 }
  0x6f   : > { %1433 = shalt.err (!%p1430_p1)
}
  0x70   : > { %1204 = dma.hbm_to_vmem [thread:$0]  (!%p1883_p0), %s260_s20, 1024, %s262_s23, %s247_s22, %s2104_s24, %s2104_s24, %s2103_s28  }
  0x71   : > { %273 = sbr.rel (%p1760_p13) target bundleno = 598 (0x256), region = 36  ;;  %s275_s6 = sand.u32 (!%p1760_p13), 1, %s1581_s10  }
  0x72   : > { %s946_s4 = sshll.u32 (!%p1760_p13), %s275_s6, 6  ;;  %s276_s25 = scalar_lea.sflag (!%p1760_p13), [#allocation7], %s275_s6 }
  0x73   : > { %s1907_s18 = scalar_lea.vmem (!%p1760_p13), [#allocation6], %s946_s4 }
  0x76   : > { %1536 = dma.done.wait (%p1732_p3), %s276_s25, 1024  }
  0x77   : > { %1538 = vsyncadd (%p1732_p3), %s276_s25, 4294966272  ;;  %s285_s29 = sand.u32 1, %s1724_s17   ;;  %s287_s28 = sand.u32 1, %s1569_s7  }
  0x78   : > { %s947_s24 = sshll.u32 %s287_s28, 6  ;;  %s286_s26 = scalar_lea.sflag [#allocation10], %s285_s29 }
  0x79   : > { %s1915_s23 = scalar_lea.vmem [#allocation9], %s947_s24 }
  0x7a   : > { %1540 = dma.done.wait (%p1740_p5), %s286_s26, 1024  }
  0x7b   : > { %1542 = vsyncadd (%p1740_p5), %s286_s26, 4294966272  ;;  %p2110_p13 = scmp.eq.s32.totalorder %s1724_s17, 0 }
  0x7d   : > { %1544 = dma.done.wait (%p2110_p13), [#allocation10], 1024   ;;  %p2111_p9 = pmov %p2110_p13 }
  0x7e   : > { %s2112_s19 = sld [smem:[#allocation23_spill]] }
  0x7f   : > { %1546 = vsyncadd (%p2111_p9), [#allocation10], 4294966272  ;;  %s2113_s21 = sld [smem:[#allocation25_spill]] }
  0x84   : > { %s322_s12 = sand.u32 1, %s2112_s19  }
  0x85   : > { %s949_s20 = sshll.u32 %s322_s12, 6  ;;  %p950_p3 = scmp.ne.s32.totalorder %s2113_s21, 0 }
  0x86   : > { %s1928_s22 = scalar_lea.vmem [#allocation12], %s949_s20 }
  0x87   : > { %337 = sbr.rel (%p950_p3) target bundleno = 157 (0x9d), region = 52 }
  0x8c   : > { %v1613_v0 = vmov 0.0  }
  0x8d   : > { %338 = vst [vmem:[#allocation2 + $0x30] sm:$0xff] %v1613_v0 }
  0x8e   : > { %339 = vst [vmem:[#allocation2] sm:$0xff] %v1613_v0 }
  0x8f   : > { %340 = vst [vmem:[#allocation2 + $0x58] sm:$0xff] %v1613_v0 }
  0x90   : > { %341 = vst [vmem:[#allocation2 + $0x18] sm:$0xff] %v1613_v0 }
  0x91   : > { %342 = vst [vmem:[#allocation2 + $0x50] sm:$0xff] %v1613_v0 }
  0x92   : > { %343 = vst [vmem:[#allocation2 + $0x68] sm:$0xff] %v1613_v0 }
  0x93   : > { %344 = vst [vmem:[#allocation2 + $0x8] sm:$0xff] %v1613_v0 }
  0x94   : > { %345 = vst [vmem:[#allocation2 + $0x48] sm:$0xff] %v1613_v0 }
  0x95   : > { %346 = vst [vmem:[#allocation2 + $0x40] sm:$0xff] %v1613_v0 }
  0x96   : > { %347 = vst [vmem:[#allocation2 + $0x20] sm:$0xff] %v1613_v0 }
  0x97   : > { %348 = vst [vmem:[#allocation2 + $0x10] sm:$0xff] %v1613_v0 }
  0x98   : > { %349 = vst [vmem:[#allocation2 + $0x38] sm:$0xff] %v1613_v0 }
  0x99   : > { %350 = vst [vmem:[#allocation2 + $0x60] sm:$0xff] %v1613_v0 }
  0x9a   : > { %351 = vst [vmem:[#allocation2 + $0x70] sm:$0xff] %v1613_v0 }
  0x9b   : > { %352 = vst [vmem:[#allocation2 + $0x78] sm:$0xff] %v1613_v0 }
  0x9c   : > { %353 = vst [vmem:[#allocation2 + $0x28] sm:$0xff] %v1613_v0 }
  0x9d PF: > { %s2114_s17 = sld [smem:[#allocation26_spill]] }
  0x9e   : > { %s2115_s5 = sld [smem:[#allocation25_spill]] }
  0xa3   : > { %s354_s13 = sld [smem:[#allocation5 + %s2114_s17]] }
  0xa9   : > { %p951_p5 = scmp.ge.s32.totalorder %s2115_s5, %s354_s13 }
  0xab   : > { %358 = sbr.rel (%p951_p5) target bundleno = 369 (0x171), region = 56 }
  0xb0   : > { %v1071_v1 = vld [vmem:[%s1915_s23 + $0x38] sm:$0xff]  ;;  %v1070_v2 = vld [vmem:[%s1915_s23 + $0x30] sm:$0xff]  ;;  %v1069_v3 = vld [vmem:[%s1915_s23 + $0x28] sm:$0xff] }
  0xb1   : > { %503 = vmatpush.bf16.msra.mxu0 %v1071_v1  ;;  %1128 = vmatpush.bf16.msra.mxu1 %v1071_v1  ;;  %v1068_v4 = vld [vmem:[%s1915_s23 + $0x20] sm:$0xff]  ;;  %v1067_v5 = vld [vmem:[%s1915_s23 + $0x18] sm:$0xff]  ;;  %v1066_v6 = vld [vmem:[%s1915_s23 + $0x10] sm:$0xff] }
  0xb2   : > { %1129 = vmatpush.bf16.msra.mxu2 %v1071_v1  ;;  %1130 = vmatpush.bf16.msra.mxu3 %v1071_v1  ;;  %v1065_v7 = vld [vmem:[%s1915_s23 + $0x8] sm:$0xff]  ;;  %v1064_v8 = vld [vmem:[%s1915_s23] sm:$0xff]  ;;  %v1058_v10 = vld [vmem:[%s1907_s18 + $0x10] sm:$0xff] }
  0xb3   : > { %v1056_v9 = vld [vmem:[%s1907_s18] sm:$0xff]  ;;  %v1062_v12 = vld [vmem:[%s1907_s18 + $0x30] sm:$0xff]  ;;  %v1057_v13 = vld [vmem:[%s1907_s18 + $0x8] sm:$0xff] }
  0xb4   : > { %v1060_v11 = vld [vmem:[%s1907_s18 + $0x20] sm:$0xff]  ;;  %v1059_v14 = vld [vmem:[%s1907_s18 + $0x18] sm:$0xff]  ;;  %v1061_v15 = vld [vmem:[%s1907_s18 + $0x28] sm:$0xff] }
  0xb5   : > { %504 = vmatpush.bf16.msra.mxu0 %v1070_v2  ;;  %1131 = vmatpush.bf16.msra.mxu1 %v1070_v2  ;;  %v1063_v16 = vld [vmem:[%s1907_s18 + $0x38] sm:$0xff]  ;;  %v359_v17 = vld [vmem:[#allocation2 + $0x30] sm:$0xff]  ;;  %v367_v23 = vld [vmem:[#allocation2 + $0x40] sm:$0xff] }
  0xb6   : > { %1132 = vmatpush.bf16.msra.mxu2 %v1070_v2  ;;  %1133 = vmatpush.bf16.msra.mxu3 %v1070_v2  ;;  %v363_v18 = vld [vmem:[#allocation2 + $0x50] sm:$0xff]  ;;  %v371_v24 = vld [vmem:[#allocation2 + $0x60] sm:$0xff]  ;;  %v364_v26 = vld [vmem:[#allocation2 + $0x68] sm:$0xff] }
  0xb7   : > { %v360_v25 = vld [vmem:[#allocation2] sm:$0xff]  ;;  %v372_v36 = vld [vmem:[#allocation2 + $0x70] sm:$0xff]  ;;  %v361_v37 = vld [vmem:[#allocation2 + $0x58] sm:$0xff] }
  0xb8   : > { %v368_v35 = vld [vmem:[#allocation2 + $0x20] sm:$0xff]  ;;  %v365_v38 = vld [vmem:[#allocation2 + $0x8] sm:$0xff]  ;;  %v369_v47 = vld [vmem:[#allocation2 + $0x10] sm:$0xff] }
  0xb9   : > { %505 = vmatpush.bf16.msra.mxu0 %v1069_v3  ;;  %1134 = vmatpush.bf16.msra.mxu1 %v1069_v3  ;;  %v373_v48 = vld [vmem:[#allocation2 + $0x78] sm:$0xff]  ;;  %v366_v50 = vld [vmem:[#allocation2 + $0x48] sm:$0xff] }
  0xba   : > { %1135 = vmatpush.bf16.msra.mxu2 %v1069_v3  ;;  %1136 = vmatpush.bf16.msra.mxu3 %v1069_v3  ;;  %v362_v49 = vld [vmem:[#allocation2 + $0x18] sm:$0xff]  ;;  %v374_v60 = vld [vmem:[#allocation2 + $0x28] sm:$0xff] }
  0xbb   : > { %v370_v59 = vld [vmem:[#allocation2 + $0x38] sm:$0xff] }
  0xbd   : > { %506 = vmatpush.bf16.msra.mxu0 %v1068_v4  ;;  %1137 = vmatpush.bf16.msra.mxu1 %v1068_v4 }
  0xbe   : > { %1138 = vmatpush.bf16.msra.mxu2 %v1068_v4  ;;  %1139 = vmatpush.bf16.msra.mxu3 %v1068_v4 }
  0xc1   : > { %507 = vmatpush.bf16.msra.mxu0 %v1067_v5  ;;  %1140 = vmatpush.bf16.msra.mxu1 %v1067_v5 }
  0xc2   : > { %1141 = vmatpush.bf16.msra.mxu2 %v1067_v5  ;;  %1142 = vmatpush.bf16.msra.mxu3 %v1067_v5 }
  0xc5   : > { %508 = vmatpush.bf16.msra.mxu0 %v1066_v6  ;;  %1143 = vmatpush.bf16.msra.mxu1 %v1066_v6 }
  0xc6   : > { %1144 = vmatpush.bf16.msra.mxu2 %v1066_v6  ;;  %1145 = vmatpush.bf16.msra.mxu3 %v1066_v6 }
  0xc9   : > { %509 = vmatpush.bf16.msra.mxu0 %v1065_v7  ;;  %1146 = vmatpush.bf16.msra.mxu1 %v1065_v7 }
  0xca   : > { %1147 = vmatpush.bf16.msra.mxu2 %v1065_v7  ;;  %1148 = vmatpush.bf16.msra.mxu3 %v1065_v7 }
  0xcd   : > { %510 = vmatpush.bf16.msra.mxu0 %v1064_v8  ;;  %1149 = vmatpush.bf16.msra.mxu1 %v1064_v8 }
  0xce   : > { %1150 = vmatpush.bf16.msra.mxu2 %v1064_v8  ;;  %1151 = vmatpush.bf16.msra.mxu3 %v1064_v8 }
  0xd0   : > { %511 = vmatmul.bf16.vlgmr.msra.gmra.mxu0 %v1056_v9  ;;  %521 = vmatmul.bf16.vlgmr.msra.gmra.mxu1 %v1058_v10 }
  0xd1   : > { %531 = vmatmul.bf16.vlgmr.msra.gmra.mxu2 %v1060_v11  ;;  %541 = vmatmul.bf16.vlgmr.msra.gmra.mxu3 %v1062_v12 }
  0xe0   : > { %516 = vmatmul.bf16.gmra.mxu0 %v1057_v13  ;;  %526 = vmatmul.bf16.gmra.mxu1 %v1059_v14 }
  0xe1   : > { %536 = vmatmul.bf16.gmra.mxu2 %v1061_v15  ;;  %546 = vmatmul.bf16.gmra.mxu3 %v1063_v16 }
 0x14d   : > { %v512_v19 = vpop.f32.mrf.mxu0  ;;  %v522_v20 = vpop.f32.mrf.mxu1 }
 0x14e   : > { %v552_v21 = vadd.f32 %v512_v19, %v359_v17  ;;  %v556_v22 = vadd.f32 %v522_v20, %v363_v18 }
 0x150   : > { %568 = vst [vmem:[#allocation2 + $0x30] sm:$0xff] %v552_v21 }
 0x151   : > { %572 = vst [vmem:[#allocation2 + $0x50] sm:$0xff] %v556_v22 }
 0x154   : > { %v532_v27 = vpop.f32.mrf.mxu2  ;;  %v542_v28 = vpop.f32.mrf.mxu3 }
 0x155   : > { %v560_v29 = vadd.f32 %v532_v27, %v367_v23  ;;  %v564_v30 = vadd.f32 %v542_v28, %v371_v24  ;;  %v514_v31 = vpop.f32.mrf.mxu0  ;;  %v524_v32 = vpop.f32.mrf.mxu1 }
 0x156   : > { %v553_v33 = vadd.f32 %v514_v31, %v360_v25  ;;  %v557_v34 = vadd.f32 %v524_v32, %v364_v26 }
 0x157   : > { %576 = vst [vmem:[#allocation2 + $0x40] sm:$0xff] %v560_v29 }
 0x158   : > { %580 = vst [vmem:[#allocation2 + $0x60] sm:$0xff] %v564_v30 }
 0x159   : > { %569 = vst [vmem:[#allocation2] sm:$0xff] %v553_v33 }
 0x15a   : > { %573 = vst [vmem:[#allocation2 + $0x68] sm:$0xff] %v557_v34 }
 0x15c   : > { %v534_v39 = vpop.f32.mrf.mxu2  ;;  %v544_v40 = vpop.f32.mrf.mxu3 }
 0x15d   : > { %v561_v41 = vadd.f32 %v534_v39, %v368_v35  ;;  %v565_v42 = vadd.f32 %v544_v40, %v372_v36  ;;  %v517_v43 = vpop.f32.mrf.mxu0  ;;  %v527_v44 = vpop.f32.mrf.mxu1 }
 0x15e   : > { %v554_v45 = vadd.f32 %v517_v43, %v361_v37  ;;  %v558_v46 = vadd.f32 %v527_v44, %v365_v38 }
 0x15f   : > { %577 = vst [vmem:[#allocation2 + $0x20] sm:$0xff] %v561_v41 }
 0x160   : > { %581 = vst [vmem:[#allocation2 + $0x70] sm:$0xff] %v565_v42 }
 0x161   : > { %570 = vst [vmem:[#allocation2 + $0x58] sm:$0xff] %v554_v45 }
 0x162   : > { %574 = vst [vmem:[#allocation2 + $0x8] sm:$0xff] %v558_v46 }
 0x164   : > { %v537_v51 = vpop.f32.mrf.mxu2  ;;  %v547_v52 = vpop.f32.mrf.mxu3 }
 0x165   : > { %v562_v53 = vadd.f32 %v537_v51, %v369_v47  ;;  %v566_v54 = vadd.f32 %v547_v52, %v373_v48  ;;  %v519_v55 = vpop.f32.mrf.mxu0  ;;  %v529_v56 = vpop.f32.mrf.mxu1 }
 0x166   : > { %v555_v57 = vadd.f32 %v519_v55, %v362_v49  ;;  %v559_v58 = vadd.f32 %v529_v56, %v366_v50 }
 0x167   : > { %578 = vst [vmem:[#allocation2 + $0x10] sm:$0xff] %v562_v53 }
 0x168   : > { %582 = vst [vmem:[#allocation2 + $0x78] sm:$0xff] %v566_v54 }
 0x169   : > { %571 = vst [vmem:[#allocation2 + $0x18] sm:$0xff] %v555_v57 }
 0x16a   : > { %575 = vst [vmem:[#allocation2 + $0x48] sm:$0xff] %v559_v58 }
 0x16c   : > { %v539_v61 = vpop.f32.mrf.mxu2  ;;  %v549_v62 = vpop.f32.mrf.mxu3 }
 0x16d   : > { %v563_v63 = vadd.f32 %v539_v61, %v370_v59  ;;  %v567_v0 = vadd.f32 %v549_v62, %v374_v60 }
 0x16f   : > { %579 = vst [vmem:[#allocation2 + $0x38] sm:$0xff] %v563_v63 }
 0x170   : > { %583 = vst [vmem:[#allocation2 + $0x28] sm:$0xff] %v567_v0 }
 0x171 PF: > { %s2116_s9 = sld [smem:[#allocation25_spill]] }
 0x177   : > { %p1016_p11 = scmp.ne.s32.totalorder %s2116_s9, 1 }
 0x178   : > { %s2117_s0 = sld [smem:[#allocation35_spill]] (!%p1016_p11) }
 0x179   : > { %587 = sbr.rel (%p1016_p11) target bundleno = 575 (0x23f), region = 60 }
 0x17e   : > { %v1079_v1 = vld [vmem:[#allocation11 + $0x38] sm:$0xff]  ;;  %v1078_v2 = vld [vmem:[#allocation11 + $0x30] sm:$0xff]  ;;  %v1077_v3 = vld [vmem:[#allocation11 + $0x28] sm:$0xff] }
 0x17f   : > { %712 = vmatpush.bf16.msra.mxu0 %v1079_v1  ;;  %1152 = vmatpush.bf16.msra.mxu1 %v1079_v1  ;;  %v1076_v4 = vld [vmem:[#allocation11 + $0x20] sm:$0xff]  ;;  %v1075_v5 = vld [vmem:[#allocation11 + $0x18] sm:$0xff]  ;;  %v1074_v7 = vld [vmem:[#allocation11 + $0x10] sm:$0xff] }
 0x180   : > { %1153 = vmatpush.bf16.msra.mxu2 %v1079_v1  ;;  %1154 = vmatpush.bf16.msra.mxu3 %v1079_v1  ;;  %v1953_v6 = vld [vmem:[%s2117_s0] ss:$0 sm:$0xff]  ;;  %v588_v8 = vld [vmem:[#allocation2 + $0x30] sm:$0xff]  ;;  %v593_v11 = vld [vmem:[#allocation2 + $0x68] sm:$0xff] }
 0x181   : > { %v589_v9 = vld [vmem:[#allocation2] sm:$0xff]  ;;  %v592_v10 = vld [vmem:[#allocation2 + $0x50] sm:$0xff]  ;;  %v608_v16 = vadd.f32 %v1953_v6, %v588_v8  ;;  %v613_v19 = vadd.f32 %v1953_v6, %v593_v11  ;;  %v1073_v21 = vld [vmem:[#allocation11 + $0x8] sm:$0xff] }
 0x182   : > { %v596_v12 = vld [vmem:[#allocation2 + $0x40] sm:$0xff]  ;;  %v601_v15 = vld [vmem:[#allocation2 + $0x70] sm:$0xff]  ;;  %v609_v17 = vadd.f32 %v1953_v6, %v589_v9  ;;  %v612_v18 = vadd.f32 %v1953_v6, %v592_v10  ;;  %v590_v38 = vld [vmem:[#allocation2 + $0x58] sm:$0xff] }
 0x183   : > { %713 = vmatpush.bf16.msra.mxu0 %v1078_v2  ;;  %1155 = vmatpush.bf16.msra.mxu1 %v1078_v2  ;;  %v597_v13 = vld [vmem:[#allocation2 + $0x20] sm:$0xff]  ;;  %v616_v20 = vadd.f32 %v1953_v6, %v596_v12  ;;  %v621_v24 = vadd.f32 %v1953_v6, %v601_v15  ;;  %v624_v25 = vmax.f32 %v608_v16, 0.0  ;;  %v629_v28 = vmax.f32 %v613_v19, 0.0  ;;  %v591_v39 = vld [vmem:[#allocation2 + $0x18] sm:$0xff]  ;;  %v594_v40 = vld [vmem:[#allocation2 + $0x8] sm:$0xff] }
 0x184   : > { %1156 = vmatpush.bf16.msra.mxu2 %v1078_v2  ;;  %1157 = vmatpush.bf16.msra.mxu3 %v1078_v2  ;;  %v600_v14 = vld [vmem:[#allocation2 + $0x60] sm:$0xff]  ;;  %v617_v22 = vadd.f32 %v1953_v6, %v597_v13  ;;  %v625_v26 = vmax.f32 %v609_v17, 0.0  ;;  %v628_v27 = vmax.f32 %v612_v18, 0.0  ;;  %v595_v41 = vld [vmem:[#allocation2 + $0x48] sm:$0xff]  ;;  %v598_v42 = vld [vmem:[#allocation2 + $0x10] sm:$0xff]  ;;  %v610_v46 = vadd.f32 %v1953_v6, %v590_v38 }
 0x185   : > { %v620_v23 = vadd.f32 %v1953_v6, %v600_v14  ;;  %v1072_v29 = vld [vmem:[#allocation11] sm:$0xff]  ;;  %v632_v30 = vmax.f32 %v616_v20, 0.0  ;;  %v637_v33 = vmax.f32 %v621_v24, 0.0  ;;  %v599_v43 = vld [vmem:[#allocation2 + $0x38] sm:$0xff]  ;;  %v603_v45 = vld [vmem:[#allocation2 + $0x28] sm:$0xff]  ;;  %v611_v47 = vadd.f32 %v1953_v6, %v591_v39 }
 0x186   : > { %v633_v31 = vmax.f32 %v617_v22, 0.0  ;;  %v640_v34 = vpack.c.bf16 %v625_v26, %v624_v25  ;;  %v642_v35 = vpack.c.bf16 %v629_v28, %v628_v27  ;;  %v602_v44 = vld [vmem:[#allocation2 + $0x78] sm:$0xff]  ;;  %v614_v48 = vadd.f32 %v1953_v6, %v594_v40 }
 0x187   : > { %714 = vmatpush.bf16.msra.mxu0 %v1077_v3  ;;  %1158 = vmatpush.bf16.msra.mxu1 %v1077_v3  ;;  %v636_v32 = vmax.f32 %v620_v23, 0.0  ;;  %v615_v49 = vadd.f32 %v1953_v6, %v595_v41  ;;  %v618_v50 = vadd.f32 %v1953_v6, %v598_v42  ;;  %v619_v51 = vadd.f32 %v1953_v6, %v599_v43 }
 0x188   : > { %1159 = vmatpush.bf16.msra.mxu2 %v1077_v3  ;;  %1160 = vmatpush.bf16.msra.mxu3 %v1077_v3  ;;  %v644_v36 = vpack.c.bf16 %v633_v31, %v632_v30  ;;  %v622_v52 = vadd.f32 %v1953_v6, %v602_v44  ;;  %v623_v53 = vadd.f32 %v1953_v6, %v603_v45  ;;  %v626_v54 = vmax.f32 %v610_v46, 0.0 }
 0x189   : > { %v646_v37 = vpack.c.bf16 %v637_v33, %v636_v32  ;;  %v627_v55 = vmax.f32 %v611_v47, 0.0  ;;  %v630_v56 = vmax.f32 %v614_v48, 0.0  ;;  %v631_v57 = vmax.f32 %v615_v49, 0.0 }
 0x18a   : > { %v634_v58 = vmax.f32 %v618_v50, 0.0  ;;  %v635_v59 = vmax.f32 %v619_v51, 0.0  ;;  %v638_v60 = vmax.f32 %v622_v52, 0.0  ;;  %v639_v61 = vmax.f32 %v623_v53, 0.0 }
 0x18b   : > { %715 = vmatpush.bf16.msra.mxu0 %v1076_v4  ;;  %1161 = vmatpush.bf16.msra.mxu1 %v1076_v4  ;;  %v641_v62 = vpack.c.bf16 %v627_v55, %v626_v54  ;;  %v643_v63 = vpack.c.bf16 %v631_v57, %v630_v56 }
 0x18c   : > { %1162 = vmatpush.bf16.msra.mxu2 %v1076_v4  ;;  %1163 = vmatpush.bf16.msra.mxu3 %v1076_v4  ;;  %v645_v0 = vpack.c.bf16 %v635_v59, %v634_v58  ;;  %v647_v1 = vpack.c.bf16 %v639_v61, %v638_v60 }
 0x18f   : > { %716 = vmatpush.bf16.msra.mxu0 %v1075_v5  ;;  %1164 = vmatpush.bf16.msra.mxu1 %v1075_v5 }
 0x190   : > { %1165 = vmatpush.bf16.msra.mxu2 %v1075_v5  ;;  %1166 = vmatpush.bf16.msra.mxu3 %v1075_v5 }
 0x193   : > { %717 = vmatpush.bf16.msra.mxu0 %v1074_v7  ;;  %1167 = vmatpush.bf16.msra.mxu1 %v1074_v7 }
 0x194   : > { %1168 = vmatpush.bf16.msra.mxu2 %v1074_v7  ;;  %1169 = vmatpush.bf16.msra.mxu3 %v1074_v7 }
 0x197   : > { %718 = vmatpush.bf16.msra.mxu0 %v1073_v21  ;;  %1170 = vmatpush.bf16.msra.mxu1 %v1073_v21 }
 0x198   : > { %1171 = vmatpush.bf16.msra.mxu2 %v1073_v21  ;;  %1172 = vmatpush.bf16.msra.mxu3 %v1073_v21 }
 0x19b   : > { %719 = vmatpush.bf16.msra.mxu0 %v1072_v29  ;;  %1173 = vmatpush.bf16.msra.mxu1 %v1072_v29 }
 0x19c   : > { %1174 = vmatpush.bf16.msra.mxu2 %v1072_v29  ;;  %1175 = vmatpush.bf16.msra.mxu3 %v1072_v29 }
 0x19e   : > { %720 = vmatmul.bf16.vlgmr.msra.gmra.mxu0 %v640_v34  ;;  %730 = vmatmul.bf16.vlgmr.msra.gmra.mxu1 %v642_v35 }
 0x19f   : > { %740 = vmatmul.bf16.vlgmr.msra.gmra.mxu2 %v644_v36  ;;  %750 = vmatmul.bf16.vlgmr.msra.gmra.mxu3 %v646_v37 }
 0x1ae   : > { %725 = vmatmul.bf16.gmra.mxu0 %v641_v62  ;;  %735 = vmatmul.bf16.gmra.mxu1 %v643_v63 }
 0x1af   : > { %745 = vmatmul.bf16.gmra.mxu2 %v645_v0  ;;  %755 = vmatmul.bf16.gmra.mxu3 %v647_v1 }
 0x21b   : > { %v721_v2 = vpop.f32.mrf.mxu0  ;;  %v731_v3 = vpop.f32.mrf.mxu1 }
 0x222   : > { %v741_v4 = vpop.f32.mrf.mxu2  ;;  %v751_v5 = vpop.f32.mrf.mxu3 }
 0x223   : > { %v723_v6 = vpop.f32.mrf.mxu0  ;;  %v733_v7 = vpop.f32.mrf.mxu1 }
 0x224   : > { %v1084_v8 = vpack.c.bf16 %v723_v6, %v721_v2  ;;  %v1094_v9 = vpack.c.bf16 %v733_v7, %v731_v3 }
 0x226   : > { %1085 = vst [vmem:[%s1928_s22] sm:$0xff] %v1084_v8  }
 0x227   : > { %1122 = vst [vmem:[%s1928_s22 + $0x10] sm:$0xff] %v1094_v9  }
 0x22a   : > { %v743_v10 = vpop.f32.mrf.mxu2  ;;  %v753_v11 = vpop.f32.mrf.mxu3 }
 0x22b   : > { %v1104_v12 = vpack.c.bf16 %v743_v10, %v741_v4  ;;  %v1114_v13 = vpack.c.bf16 %v753_v11, %v751_v5  ;;  %v726_v14 = vpop.f32.mrf.mxu0  ;;  %v736_v15 = vpop.f32.mrf.mxu1 }
 0x22d   : > { %1124 = vst [vmem:[%s1928_s22 + $0x20] sm:$0xff] %v1104_v12  }
 0x22e   : > { %1126 = vst [vmem:[%s1928_s22 + $0x30] sm:$0xff] %v1114_v13  }
 0x232   : > { %v746_v16 = vpop.f32.mrf.mxu2  ;;  %v756_v17 = vpop.f32.mrf.mxu3 }
 0x233   : > { %v728_v18 = vpop.f32.mrf.mxu0  ;;  %v738_v19 = vpop.f32.mrf.mxu1 }
 0x234   : > { %v1089_v20 = vpack.c.bf16 %v728_v18, %v726_v14  ;;  %v1099_v21 = vpack.c.bf16 %v738_v19, %v736_v15 }
 0x236   : > { %1121 = vst [vmem:[%s1928_s22 + $0x8] sm:$0xff] %v1089_v20  }
 0x237   : > { %1123 = vst [vmem:[%s1928_s22 + $0x18] sm:$0xff] %v1099_v21  }
 0x23a   : > { %v748_v22 = vpop.f32.mrf.mxu2  ;;  %v758_v23 = vpop.f32.mrf.mxu3 }
 0x23b   : > { %v1109_v24 = vpack.c.bf16 %v748_v22, %v746_v16  ;;  %v1119_v25 = vpack.c.bf16 %v758_v23, %v756_v17 }
 0x23d   : > { %1125 = vst [vmem:[%s1928_s22 + $0x28] sm:$0xff] %v1109_v24  }
 0x23e   : > { %1127 = vst [vmem:[%s1928_s22 + $0x38] sm:$0xff] %v1119_v25  }
 0x23f PF: > { %s2118_s6 = sld [smem:[#allocation26_spill]]  ;;  %s806_s26 = sshll.u32 %s1928_s22, 4  ;;  %s807_s26 = int_to_ptr.vmem [resolvable:$true] %s806_s26 }
 0x240   : > { %s2120_s25 = sld [smem:[#allocation29_spill]]  ;;  %s794_s19 = scalar_lea.sflag [#allocation8], %s322_s12 }
 0x241   : > { %s2121_s28 = sld [smem:[#allocation37_spill]] }
 0x245   : > { %s1080_s18 = sshll.u32 %s2118_s6, 6 }
 0x246   : > { %p2122_p4 = scmp.ne.s32.totalorder %s2120_s25, 0 }
 0x247   : > { %s805_s24 = scalar_lea.hbm %s2121_s28, %s1080_s18  ;;  %s1469_s5 = scalar_lea.hbm %s2121_s28, 128 }
 0x248   : > { %s808_s23 = sshll.u32 %s805_s24, 4  ;;  %s809_s23 = int_to_ptr.hbm [resolvable:$true] %s808_s23 }
 0x249   : > { %s1463_s20 = sshra.s32 %s809_s23, 4  ;;  %s1464_s20 = int_to_ptr.hbm [resolvable:$true] %s1463_s20 }
 0x24a   : > { %s1465_s21 = scalar_lea.hbm %s1464_s20, 64  ;;  %p1470_p12 = scmp.lt.s32.totalorder %s1464_s20, %s2121_s28 }
 0x24b   : > { %p1466_p0 = scmp.ne.s32.totalorder %s1464_s20, %s1465_s21  ;;  %p1471_p2 = scmp.lt.s32.totalorder %s1469_s5, %s1465_s21 }
 0x24d   : > { %p1467_p7 = pnand %p1466_p0, %p2122_p4  ;;  %p1472_p8 = por %p1471_p2, %p1470_p12 }
 0x24f   : > { %p1468_p10 = pneg %p1467_p7 }
 0x251   : > { %p1473_p6 = pnand %p1472_p8, %p1468_p10 }
 0x253   : > { %1476 = shalt.err (!%p1473_p6)
}
 0x254   : > { %s1614_s12 = smov 64   ;;  %s1615_s22 = smov 4  }
 0x255   : > { %1188 = dma.vmem_to_hbm [thread:$0]  (%p2122_p4), %s807_s26, 1024, %s809_s23, %s794_s19, %s1614_s12, %s1614_s12, %s1615_s22  }
 0x256 PF: > { %s2123_s27 = sld [smem:[#allocation22_spill]]  ;;  %p1212_p1 = scmp.ge.s32.totalorder %s1605_s16, 2 }
 0x257   : > { %s2124_s0 = sld [smem:[#allocation30_spill]] }
 0x25c   : > { %s823_s6 = sand.u32 1, %s2123_s27  }
 0x25d   : > { %p2125_p13 = scmp.ne.s32.totalorder %s2124_s0, 0  ;;  %s824_s4 = scalar_lea.sflag [#allocation8], %s823_s6 }
 0x25f   : > { %p1206_p9 = pnand %p1212_p1, %p2125_p13 }
 0x261   : > { %p1207_p3 = pneg %p1206_p9 }
 0x263   : > { %1548 = dma.done.wait (%p1207_p3), %s824_s4, 1024  }
 0x264   : > { %1550 = vsyncadd (%p1207_p3), %s824_s4, 4294966272  ;;  %s38_s16 = sadd.s32 1, %s1605_s16   ;;  %s2127_s0 = sld [smem:[#allocation23_spill]] }
 0x265   : > { %p2001_p5 = scmp.ge.s32.totalorder %s38_s16, 6   ;;  %s2128_s29 = sld [smem:[#allocation24_spill]] }
 0x266   : > { %s2129_s1 = sld [smem:[#allocation33_spill]]  ;;  %s2134_s30 = smov %s1569_s7 }
 0x267   : > { %s2130_s25 = sld [smem:[#allocation34_spill]]  ;;  %s2135_s7 = smov %s1573_s8 }
 0x268   : > { %s2131_s12 = sld [smem:[#allocation27_spill]]  ;;  %s2136_s8 = smov %s1868_s14 }
 0x269   : > { %s2132_s24 = sld [smem:[#allocation31_spill]]  ;;  %s2137_s9 = smov %s1581_s10 }
 0x26a   : > { %s2133_s26 = sld [smem:[#allocation32_spill]]  ;;  %s2138_s10 = smov %s1585_s11 }
 0x26b   : > { %s2140_s13 = smov %s1601_s15 }
 0x26c   :  { %37 = sbr.rel (!%p2001_p5) target bundleno = 21 (0x15), region = 110 }
 0x26d   : > { %s2139_s11 = smov %s2130_s25 }
 0x26f   : > { %s2141_s14 = smov %s2132_s24 }
 0x270   : > { %s2142_s15 = smov %s2133_s26 }
 0x271   :  { %830 = vsyncpa [#allocation7], 1 }
 0x272   :  { %832 = vsyncpa [#allocation7 + $0x1], 1 }
 0x273   :  { %833 = vsyncpa [#allocation10], 1 }
 0x274   :  { %835 = vsyncpa [#allocation10 + $0x1], 1 }
 0x275   :  { %836 = vsyncpa [#allocation8], 1 }
 0x276   :  { %838 = vsyncpa [#allocation8 + $0x1], 1 }

</bundles_post_ra>
